<compile_context>
chip_gen: v6e
topology: v6e:2x2x1
jax: 0.10.0
libtpu: 0.0.40
codegen_flags: <defaults>
</compile_context>

<pallas_src>
import math
import numpy as np

import jax
import jax.numpy as jnp
from jax.experimental import pallas as pl
from jax.experimental.pallas import tpu as pltpu

# ----- synthetic configuration for the module's undefined-in-source globals --
SAMPLE_RATE = 16000   # target rate of F.resample and MelSpectrogram
N_FFT = 256
WIN_LENGTH = 256
HOP_LENGTH = 64
N_MELS = 32

# lane/sublane aligned sizes used by the kernels
N_FREQ = N_FFT // 2 + 1          # 129 rFFT bins
N_FREQ_PAD = 256                 # real part padded to a lane multiple
IM_COLS = 128                    # imag part: bins 0..127 (DC & Nyquist imag == 0)
DFT_COLS = N_FREQ_PAD + IM_COLS  # 384 fused [cos*win | -sin*win] columns
N_MELS_PAD = 128                 # lane-dense mel output, sliced back to N_MELS
RATIO = N_FFT // HOP_LENGTH      # 4 hop-chunks per STFT frame

TILE_M = 1024                    # max rows per resample tile
TILE_F = 1024                    # max STFT frames per melspec tile
VMEM_LIMIT_BYTES = 32 * 1024 * 1024   # per-step buffers are only a few MiB


def _round_up(x, m):
    return (x + m - 1) // m * m


def _pick_tile(rows, max_tile, min_steps=1):
    """Pad-minimizing row tile: >=16 (bf16 sublane packing), <= max_tile."""
    steps = max(min_steps, -(-rows // max_tile))
    return max(16, _round_up(-(-rows // steps), 16))


# ============================ Pallas kernels =================================
def _resample_kernel(frames_ref, kern_ref, out_ref):
    """Polyphase sinc resampling as one MXU matmul; bf16 store.

    frames_ref: (tile_m, K_pad)    bf16 strided windows of the padded wave
    kern_ref:   (K_pad, new_pad)   bf16 zero-padded sinc/hann filter bank
    out_ref:    (tile_m, new_pad)  bf16 (f32 accumulation in the MXU)
    """
    acc = jnp.dot(frames_ref[...], kern_ref[...], preferred_element_type=jnp.float32)
    out_ref[...] = acc.astype(out_ref.dtype)


# ============================ parameter setup ================================
def _sinc_resample_kernel(orig_freq, new_freq, lowpass_filter_width=6, rolloff=0.99):
    """Reproduces torchaudio.functional.resample's sinc_interp_hann kernel."""
    gcd = math.gcd(int(orig_freq), int(new_freq))
    orig = int(orig_freq) // gcd
    new = int(new_freq) // gcd
    base_freq = min(orig, new) * rolloff
    width = math.ceil(lowpass_filter_width * orig / base_freq)
    idx = np.arange(-width, width + orig, dtype=np.float64) / orig           # (Kw,)
    t = np.arange(0, -new, -1, dtype=np.float64)[:, None] / new + idx[None]  # (new, Kw)
    t = t * base_freq
    t = np.clip(t, -lowpass_filter_width, lowpass_filter_width)
    window = np.cos(t * np.pi / lowpass_filter_width / 2.0) ** 2
    t = t * np.pi
    scale = base_freq / orig
    safe_t = np.where(t == 0.0, 1.0, t)
    kernels = np.where(t == 0.0, 1.0, np.sin(safe_t) / safe_t) * window * scale
    return kernels.astype(np.float32), width, orig, new


def _melscale_fbanks(n_freqs, f_min, f_max, n_mels, sample_rate):
    """torchaudio.functional.melscale_fbanks (mel_scale='htk', norm=None)."""
    all_freqs = np.linspace(0.0, sample_rate // 2, n_freqs)
    hz_to_mel = lambda f: 2595.0 * np.log10(1.0 + f / 700.0)
    mel_to_hz = lambda m: 700.0 * (10.0 ** (m / 2595.0) - 1.0)
    m_pts = np.linspace(hz_to_mel(f_min), hz_to_mel(f_max), n_mels + 2)
    f_pts = mel_to_hz(m_pts)
    f_diff = f_pts[1:] - f_pts[:-1]
    slopes = f_pts[None, :] - all_freqs[:, None]        # (n_freqs, n_mels+2)
    down = (-1.0 * slopes[:, :-2]) / f_diff[:-1]
    up = slopes[:, 2:] / f_diff[1:]
    fb = np.maximum(0.0, np.minimum(down, up))
    return fb.astype(np.float32)                        # (n_freqs, n_mels)


def _melspec_constants():
    """Fused, window-folded DFT matrix (384 cols) and padded mel filterbank."""
    n = np.arange(N_FFT, dtype=np.float64)
    window = 0.5 - 0.5 * np.cos(2.0 * np.pi * n / WIN_LENGTH)   # periodic Hann
    k = np.arange(N_FREQ, dtype=np.float64)                     # 0..128
    ang = 2.0 * np.pi * np.outer(n, k) / N_FFT                  # (256, 129)
    dft = np.zeros((N_FFT, DFT_COLS), np.float32)
    dft[:, :N_FREQ] = (np.cos(ang) * window[:, None]).astype(np.float32)
    dft[:, N_FREQ_PAD:N_FREQ_PAD + IM_COLS] = (
        -np.sin(ang[:, :IM_COLS]) * window[:, None]).astype(np.float32)
    fb = np.zeros((N_FREQ_PAD, N_MELS_PAD), np.float32)
    fb[:N_FREQ, :N_MELS] = _melscale_fbanks(
        N_FREQ, 0.0, SAMPLE_RATE / 2.0, N_MELS, SAMPLE_RATE)
    return dft, fb


# ============================ JAX wrappers ===================================
def resample(waveform, orig_freq, new_freq):
    """F.resample(waveform, orig_freq, new_freq), default sinc_interp_hann params.

    Returns bfloat16 (the resampled signal only feeds the mel stage)."""
    B, L = waveform.shape
    kernels, width, orig, new = _sinc_resample_kernel(orig_freq, new_freq)
    Kw = kernels.shape[1]
    K_pad = _round_up(Kw, 128)        # 459 -> 512 lane-dense windows
    new_pad = _round_up(new, 128)     # 320 -> 384 lane-dense output
    n_blocks = L // orig + 1

    kern_np = np.zeros((K_pad, new_pad), np.float32)
    kern_np[:Kw, :new] = kernels.T
    kern_t = jnp.asarray(kern_np, dtype=jnp.bfloat16)

    # Polyphase windows straight from non-overlapping `orig`-sized chunks of the
    # padded wave: frame p = [chunk_p | head of chunk_{p+1} ...]  (no gather,
    # no 882-wide intermediate).
    m = -(-K_pad // orig)                                # halo chunks per frame
    total_chunks = n_blocks + m
    pad_right = orig * total_chunks - width - L
    padded = jnp.pad(waveform, ((0, 0), (width, pad_right))).astype(jnp.bfloat16)
    chunks = padded.reshape(B, total_chunks, orig)
    parts = []
    for s in range(m):
        w = min(orig, K_pad - s * orig)
        parts.append(chunks[:, s:s + n_blocks, :w])
    frames = jnp.concatenate(parts, axis=-1).reshape(B * n_blocks, K_pad)

    rows = B * n_blocks
    # >=2 grid steps when rows permit so v7x's second TensorCore gets work.
    tile_m = _pick_tile(rows, TILE_M, min_steps=2 if rows > 32 else 1)
    rows_pad = _round_up(rows, tile_m)
    if rows_pad != rows:
        frames = jnp.pad(frames, ((0, rows_pad - rows), (0, 0)))

    cost = pl.CostEstimate(
        flops=2 * rows_pad * K_pad * new_pad,
        transcendentals=0,
        bytes_accessed=int(rows_pad * K_pad * 2 + rows_pad * new_pad * 2
                           + K_pad * new_pad * 2))

    out = pl.pallas_call(
        _resample_kernel,
        out_shape=jax.ShapeDtypeStruct((rows_pad, new_pad), jnp.bfloat16),
        grid=(rows_pad // tile_m,),
        in_specs=[pl.BlockSpec((tile_m, K_pad), lambda i: (i, 0)),
                  pl.BlockSpec((K_pad, new_pad), lambda i: (0, 0))],  # resident weights
        out_specs=pl.BlockSpec((tile_m, new_pad), lambda i: (i, 0)),
        compiler_params=pltpu.CompilerParams(
            dimension_semantics=("parallel",),
            vmem_limit_bytes=VMEM_LIMIT_BYTES),
        cost_estimate=cost,
    )(frames, kern_t)

    out = out[:rows, :new].reshape(B, n_blocks * new)
    target_length = int(math.ceil(new * L / orig))
    return out[:, :target_length]


def mel_spectrogram(waveform):
    """T.MelSpectrogram: STFT (center, reflect, periodic Hann, power=2) -> HTK mel.

    STFT frames are assembled inside the kernel from hop-sized chunks of the
    padded waveform (main tile + 3-chunk halo), so the 4x-expanded frame matrix
    never touches HBM."""
    B, L = waveform.shape
    n_frames = 1 + L // HOP_LENGTH
    pad = N_FFT // 2
    padded = jnp.pad(waveform, ((0, 0), (pad, pad)), mode="reflect").astype(jnp.bfloat16)

    # >=2 frame tiles is only needed for v7x's second core when B == 1.
    tile_f = _pick_tile(n_frames, TILE_F,
                        min_steps=2 if (B < 2 and n_frames > 32) else 1)
    n_tiles = -(-n_frames // tile_f)
    total_chunks = (n_tiles + 1) * tile_f        # main blocks + room for halo reshape
    padded = jnp.pad(padded, ((0, 0), (0, total_chunks * HOP_LENGTH - padded.shape[1])))
    chunks = padded.reshape(B, total_chunks, HOP_LENGTH)
    # halo[b, j] = chunks[b, (j+1)*tile_f : (j+1)*tile_f + RATIO-1]  (tiny)
    halo = chunks[:, tile_f:].reshape(B, n_tiles, tile_f, HOP_LENGTH)[:, :, :RATIO - 1]

    dft_np, fb_np = _melspec_constants()
    dft = jnp.asarray(dft_np, dtype=jnp.bfloat16)   # MXU operand
    fb = jnp.asarray(fb_np, dtype=jnp.float32)      # mel matmul kept in f32 (tiny)

    frames_pad = n_tiles * tile_f

    def kernel(main_ref, halo_ref, dft_ref, fb_ref, out_ref):
        # (tile_f + 3, HOP) chunk strip -> (tile_f, N_FFT) frames via shifted slices
        ext = jnp.concatenate([main_ref[...], halo_ref[...]], axis=0)
        frames = jnp.concatenate(
            [ext[s:s + tile_f, :] for s in range(RATIO)], axis=-1)
        # fused window + rDFT: [cos*win (256 cols) | -sin*win (128 cols)]
        cs = jnp.dot(frames, dft_ref[...], preferred_element_type=jnp.float32)
        re = cs[:, :N_FREQ_PAD]
        im = cs[:, N_FREQ_PAD:]
        re2 = re * re
        # |X[k]|^2: imag exists only for bins 0..127 (DC/Nyquist imag == 0)
        power = jnp.concatenate([re2[:, :IM_COLS] + im * im, re2[:, IM_COLS:]],
                                axis=-1)                       # (tile_f, 256) f32
        out_ref[...] = jnp.dot(power, fb_ref[...],
                               preferred_element_type=jnp.float32)

    cost = pl.CostEstimate(
        flops=B * frames_pad * (2 * N_FFT * DFT_COLS + 2 * N_FREQ_PAD * N_MELS_PAD),
        transcendentals=0,
        bytes_accessed=int(chunks.size * 2 + halo.size * 2 + dft.size * 2
                           + fb.size * 4 + B * frames_pad * N_MELS_PAD * 4))

    mel = pl.pallas_call(
        kernel,
        out_shape=jax.ShapeDtypeStruct((B, frames_pad, N_MELS_PAD), jnp.float32),
        grid=(B, n_tiles),
        in_specs=[
            pl.BlockSpec((None, tile_f, HOP_LENGTH), lambda b, j: (b, j, 0)),
            pl.BlockSpec((None, None, RATIO - 1, HOP_LENGTH), lambda b, j: (b, j, 0, 0)),
            pl.BlockSpec((N_FFT, DFT_COLS), lambda b, j: (0, 0)),
            pl.BlockSpec((N_FREQ_PAD, N_MELS_PAD), lambda b, j: (0, 0)),
        ],
        out_specs=pl.BlockSpec((None, tile_f, N_MELS_PAD), lambda b, j: (b, j, 0)),
        compiler_params=pltpu.CompilerParams(
            dimension_semantics=("parallel", "parallel"),
            vmem_limit_bytes=VMEM_LIMIT_BYTES),
        cost_estimate=cost,
    )(chunks, halo, dft, fb)

    # (B, T_pad, 128) -> (B, n_mels, T) (torchaudio layout); slice+transpose is tiny
    return mel[:, :n_frames, :N_MELS].transpose(0, 2, 1)


def vocoder_forward(waveform, orig_freq=22050):
    """Vocoder.forward: resample to SAMPLE_RATE, then MelSpectrogram."""
    resampled = resample(waveform, orig_freq, SAMPLE_RATE)
    return mel_spectrogram(resampled)

# TODO(synk): Vocoder.inverse (InverseMelScale least-squares + GriffinLim phase
# iterations) is an iterative optimization procedure and is not implemented here.


# ================================ main =======================================
if __name__ == "__main__":
    key = jax.random.PRNGKey(0)
    # 0.1 s of 22.05 kHz audio, batch of 2  (small synthetic input)
    x = jax.random.normal(key, (2, 2205), dtype=jnp.float32)

    mel = jax.block_until_ready(vocoder_forward(x, orig_freq=22050))

    B, L = x.shape
    resampled = jax.block_until_ready(resample(x, 22050, SAMPLE_RATE))
    exp_frames = 1 + resampled.shape[1] // HOP_LENGTH
    assert mel.shape == (B, N_MELS, exp_frames), mel.shape
    assert bool(jnp.all(jnp.isfinite(mel)))

    # ---- resample stage vs f32 direct polyphase reference ----
    kernels, width, orig, new = _sinc_resample_kernel(22050, SAMPLE_RATE)
    n_blocks = L // orig + 1
    target_length = int(math.ceil(new * L / orig))
    wav = np.asarray(x, np.float32)
    padw = np.pad(wav, ((0, 0), (width, orig * (n_blocks + 2))))
    idx = np.arange(n_blocks)[:, None] * orig + np.arange(kernels.shape[1])[None, :]
    ref_rs = np.einsum("bpk,jk->bpj", padw[:, idx], kernels,
                       optimize=True).reshape(B, -1)[:, :target_length]
    rs = np.asarray(resampled.astype(jnp.float32))
    err_rs = float(np.max(np.abs(rs - ref_rs)))
    rs_scale = float(np.max(np.abs(ref_rs))) + 1e-6
    assert err_rs <= 5e-2 * rs_scale, (err_rs, rs_scale)

    # ---- melspec stage vs true f32 reference (no bf16 power cast) ----
    dft_np, fb_np = _melspec_constants()
    dft_f = jnp.asarray(dft_np, jnp.float32)
    fb_f = jnp.asarray(fb_np, jnp.float32)
    pad = N_FFT // 2
    padded = jnp.pad(resampled.astype(jnp.float32), ((0, 0), (pad, pad)), mode="reflect")
    fidx = np.arange(exp_frames)[:, None] * HOP_LENGTH + np.arange(N_FFT)[None, :]
    fr = padded[:, fidx]
    cs = jnp.einsum("btn,nf->btf", fr, dft_f, precision=jax.lax.Precision.HIGHEST)
    re = cs[..., :N_FREQ_PAD]
    im = cs[..., N_FREQ_PAD:]
    power = (re * re).at[..., :IM_COLS].add(im * im)
    ref = jnp.einsum("btf,fm->btm", power, fb_f,
                     precision=jax.lax.Precision.HIGHEST)[..., :N_MELS].transpose(0, 2, 1)
    scale = float(jnp.max(jnp.abs(ref))) + 1e-6
    err = float(jnp.max(jnp.abs(mel - ref)))
    assert err <= 5e-2 * scale, (err, scale)

    print("KERNEL_OK")
</pallas_src>

<mosaic_0001>
module attributes {stable_mosaic.version = 11 : i64} {
  func.func @_resample_kernel(%arg0: i32, %arg1: memref<16x512xbf16, #tpu.memory_space<vmem>>, %arg2: memref<512x384xbf16, #tpu.memory_space<vmem>>, %arg3: memref<16x384xbf16, #tpu.memory_space<vmem>>) attributes {dimension_semantics = [#tpu.dimension_semantics<parallel>], iteration_bounds = array<i64: 1>, scalar_prefetch = 0 : i64, scratch_operands = 0 : i64, tpu.core_type = #tpu.core_type<tc>, window_params = [{transform_indices = @transform_0, window_bounds = array<i64: 16, 512>}, {pipeline_mode = #tpu.pipeline_mode<synchronous>, transform_indices = @transform_1, window_bounds = array<i64: 512, 384>}, {transform_indices = @transform_2, window_bounds = array<i64: 16, 384>}]} {
    %c0 = arith.constant 0 : index
    %c0_0 = arith.constant 0 : index
    %0 = vector.load %arg1[%c0, %c0_0] : memref<16x512xbf16, #tpu.memory_space<vmem>>, vector<16x512xbf16>
    %c0_1 = arith.constant 0 : index
    %c0_2 = arith.constant 0 : index
    %1 = vector.load %arg2[%c0_1, %c0_2] : memref<512x384xbf16, #tpu.memory_space<vmem>>, vector<512x384xbf16>
    %cst = arith.constant dense<0.000000e+00> : vector<16x384xf32>
    %2 = tpu.matmul %0, %1, %cst {dimension_numbers = #tpu.dot_dimension_numbers<[1], [0], [0], [1], [0, 0, 1, 1], [], []>} : vector<16x512xbf16>, vector<512x384xbf16>, vector<16x384xf32> -> vector<16x384xf32>
    %3 = arith.truncf %2 : vector<16x384xf32> to vector<16x384xbf16>
    %c0_3 = arith.constant 0 : index
    %c0_4 = arith.constant 0 : index
    %4 = vector.load %arg3[%c0_3, %c0_4] : memref<16x384xbf16, #tpu.memory_space<vmem>>, vector<16x384xbf16>
    tpu.vector_store %arg3[%c0_3, %c0_4], %3 {strides = array<i32>} : memref<16x384xbf16, #tpu.memory_space<vmem>>, vector<16x384xbf16>,
    return
  }
  func.func @transform_0(%arg0: i32) -> (i32, i32) {
    %c0_i32 = arith.constant 0 : i32
    %c0_i32_0 = arith.constant 0 : i32
    return %arg0, %c0_i32 : i32, i32
  }
  func.func @transform_1(%arg0: i32) -> (i32, i32) {
    %c0_i32 = arith.constant 0 : i32
    %c0_i32_0 = arith.constant 0 : i32
    %c0_i32_1 = arith.constant 0 : i32
    return %c0_i32, %c0_i32_0 : i32, i32
  }
  func.func @transform_2(%arg0: i32) -> (i32, i32) {
    %c0_i32 = arith.constant 0 : i32
    %c0_i32_0 = arith.constant 0 : i32
    return %arg0, %c0_i32 : i32, i32
  }
}

</mosaic_0001>

<bundles_post_ra>
// kernel: tpu_custom_call.1
= control target key start
LH: loop header
LB: loop body
LE: loop exit
PB: predicated region body
PF: predicated region fallthrough
CT: control target
= control target key end

     0   :  { %7 = vsyncpa [#allocation3], 0  ;;  %s1319_s0 = inlined_call_operand.hbm [shape: bf16[16,512], index: 0, kind: input, shape index: {}]   ;;  %s1320_s1 = inlined_call_operand.hbm [shape: bf16[512,384], index: 1, kind: input, shape index: {}]   ;;  %s1321_s2 = inlined_call_operand.hbm [shape: bf16[16,384], index: 2, kind: output, shape index: {}]  }
   0x1   :  { %8 = vsyncpa [#allocation6], 0 }
   0x2   :  { %9 = vsyncpa [#allocation4], 0  ;;  %s1274_s9 = smov [#allocation2]  }
   0x3   :  { %s15_s10 = sshll.u32 %s1274_s9, 4  ;;  %s16_s10 = int_to_ptr.vmem [resolvable:$true] %s15_s10 }
   0x4   :  { %s1216_s11 = scalar_lea.vmem %s16_s10, 512  ;;  %p1221_p1 = scmp.lt.s32.totalorder %s16_s10, %s16_s10 }
   0x5   :  { %p1217_p0 = scmp.ne.s32.totalorder %s16_s10, %s1216_s11  ;;  %p1222_p2 = scmp.lt.s32.totalorder %s1216_s11, %s1216_s11 }
   0x7   :  { %p1223_p3 = por %p1222_p2, %p1221_p1 }
   0x9   :  { %p1224_p4 = pnand %p1223_p3, %p1217_p0 }
   0xb   :  { %1227 = shalt.err (!%p1224_p4)
}
   0xc   :  { %s1275_s12 = smov 256   ;;  %s1276_s13 = smov 16  }
   0xd   :  { %21 = dma.hbm_to_vmem [thread:$0]  %s1319_s0, 512, %s16_s10, [#allocation3], %s1275_s12, %s1275_s12, %s1276_s13  }
   0xe   :  { %s1277_s16 = smov [#allocation5]  }
   0xf   :  { %s27_s17 = sshll.u32 %s1277_s16, 4  ;;  %s28_s17 = int_to_ptr.vmem [resolvable:$true] %s27_s17 }
  0x10   :  { %s1236_s18 = scalar_lea.vmem %s28_s17, 12288  ;;  %p1241_p6 = scmp.lt.s32.totalorder %s28_s17, %s28_s17 }
  0x11   :  { %p1237_p5 = scmp.ne.s32.totalorder %s28_s17, %s1236_s18  ;;  %p1242_p7 = scmp.lt.s32.totalorder %s1236_s18, %s1236_s18 }
  0x13   :  { %p1243_p8 = por %p1242_p7, %p1241_p6 }
  0x15   :  { %p1244_p9 = pnand %p1243_p8, %p1237_p5 }
  0x17   :  { %1247 = shalt.err (!%p1244_p9)
}
  0x18   :  { %s1278_s19 = smov 192   ;;  %s1279_s20 = smov 12  }
  0x19   :  { %33 = dma.hbm_to_vmem [thread:$0]  %s1320_s1, 12288, %s28_s17, [#allocation6], %s1278_s19, %s1278_s19, %s1279_s20  }
  0x1a   :  { %1268 = dma.done.wait [#allocation3], 512  }
  0x1b   :  { %1269 = vsyncadd [#allocation3], 4294966784 }
  0x1c   :  { %1270 = dma.done.wait [#allocation6], 12288  }
  0x1d   :  { %1271 = vsyncadd [#allocation6], 4294955008  ;;  %v1074_v0 = vld [vmem:[#allocation5 + $0xac] ss:$12 sps:$4 sm:$0xff]   ;;  %v1078_v2 = vld [vmem:[#allocation5 + $0xa8] ss:$12 sps:$4 sm:$0xff]  }
  0x1e   :  { %v1076_v1 = vld [vmem:[#allocation5 + $0x22c] ss:$12 sps:$4 sm:$0xff]   ;;  %705 = vmatprep.subr.bf16.mxu0 %v1074_v0  ;;  %v1079_v3 = vld [vmem:[#allocation5 + $0x228] ss:$12 sps:$4 sm:$0xff]   ;;  %v1084_v6 = vld [vmem:[#allocation5 + $0x90] ss:$12 sps:$4 sm:$0xff]  }
  0x1f   :  { %748 = vmatprep.subr.bf16.mxu1 %v1076_v1  ;;  %v1080_v4 = vld [vmem:[#allocation5 + $0x94] ss:$12 sps:$4 sm:$0xff]   ;;  %706 = vmatpush1.bf16.msra.mxu0 %v1078_v2  ;;  %v1085_v7 = vld [vmem:[#allocation5 + $0x210] ss:$12 sps:$4 sm:$0xff]   ;;  %v1090_v10 = vld [vmem:[#allocation5 + $0x78] ss:$12 sps:$4 sm:$0xff]  }
  0x20   :  { %749 = vmatpush1.bf16.msra.mxu1 %v1079_v3  ;;  %v1082_v5 = vld [vmem:[#allocation5 + $0x214] ss:$12 sps:$4 sm:$0xff]   ;;  %707 = vmatprep.subr.bf16.mxu0 %v1080_v4  ;;  %v1086_v8 = vld [vmem:[#allocation5 + $0x7c] ss:$12 sps:$4 sm:$0xff]   ;;  %v1091_v11 = vld [vmem:[#allocation5 + $0x1f8] ss:$12 sps:$4 sm:$0xff]  }
  0x21   :  { %750 = vmatprep.subr.bf16.mxu1 %v1082_v5  ;;  %v1088_v9 = vld [vmem:[#allocation5 + $0x1fc] ss:$12 sps:$4 sm:$0xff]   ;;  %v1092_v12 = vld [vmem:[#allocation5 + $0x64] ss:$12 sps:$4 sm:$0xff]   ;;  %v1096_v14 = vld [vmem:[#allocation5 + $0x60] ss:$12 sps:$4 sm:$0xff]  }
  0x22   :  { %v1094_v13 = vld [vmem:[#allocation5 + $0x1e4] ss:$12 sps:$4 sm:$0xff]   ;;  %v1097_v15 = vld [vmem:[#allocation5 + $0x1e0] ss:$12 sps:$4 sm:$0xff]   ;;  %v1102_v18 = vld [vmem:[#allocation5 + $0x48] ss:$12 sps:$4 sm:$0xff]  }
  0x23   :  { %708 = vmatpush1.bf16.msra.mxu0 %v1084_v6  ;;  %v1098_v16 = vld [vmem:[#allocation5 + $0x4c] ss:$12 sps:$4 sm:$0xff]   ;;  %v1103_v19 = vld [vmem:[#allocation5 + $0x1c8] ss:$12 sps:$4 sm:$0xff]   ;;  %v1108_v22 = vld [vmem:[#allocation5 + $0x30] ss:$12 sps:$4 sm:$0xff]  }
  0x24   :  { %751 = vmatpush1.bf16.msra.mxu1 %v1085_v7  ;;  %709 = vmatprep.subr.bf16.mxu0 %v1086_v8  ;;  %v1100_v17 = vld [vmem:[#allocation5 + $0x1cc] ss:$12 sps:$4 sm:$0xff]   ;;  %v1104_v20 = vld [vmem:[#allocation5 + $0x34] ss:$12 sps:$4 sm:$0xff]   ;;  %v1109_v23 = vld [vmem:[#allocation5 + $0x1b0] ss:$12 sps:$4 sm:$0xff]  }
  0x25   :  { %752 = vmatprep.subr.bf16.mxu1 %v1088_v9  ;;  %v1106_v21 = vld [vmem:[#allocation5 + $0x1b4] ss:$12 sps:$4 sm:$0xff]   ;;  %v1110_v24 = vld [vmem:[#allocation5 + $0x1c] ss:$12 sps:$4 sm:$0xff]   ;;  %v1114_v26 = vld [vmem:[#allocation5 + $0x18] ss:$12 sps:$4 sm:$0xff]  }
  0x26   :  { %v1112_v25 = vld [vmem:[#allocation5 + $0x19c] ss:$12 sps:$4 sm:$0xff]   ;;  %v1115_v27 = vld [vmem:[#allocation5 + $0x198] ss:$12 sps:$4 sm:$0xff]   ;;  %v1120_v30 = vld [vmem:[#allocation5] ss:$12 sps:$4 sm:$0xff]  }
  0x27   :  { %710 = vmatpush1.bf16.msra.mxu0 %v1090_v10  ;;  %v1116_v28 = vld [vmem:[#allocation5 + $0x4] ss:$12 sps:$4 sm:$0xff]   ;;  %v1121_v31 = vld [vmem:[#allocation5 + $0x180] ss:$12 sps:$4 sm:$0xff]   ;;  %v1126_v34 = vld [vmem:[#allocation5 + $0x168] ss:$12 sps:$4 sm:$0xff]  }
  0x28   :  { %753 = vmatpush1.bf16.msra.mxu1 %v1091_v11  ;;  %711 = vmatprep.subr.bf16.mxu0 %v1092_v12  ;;  %v1118_v29 = vld [vmem:[#allocation5 + $0x184] ss:$12 sps:$4 sm:$0xff]   ;;  %v1122_v32 = vld [vmem:[#allocation5 + $0x16c] ss:$12 sps:$4 sm:$0xff]   ;;  %v1127_v35 = vld [vmem:[#allocation5 + $0x2e8] ss:$12 sps:$4 sm:$0xff]  }
  0x29   :  { %754 = vmatprep.subr.bf16.mxu1 %v1094_v13  ;;  %v1124_v33 = vld [vmem:[#allocation5 + $0x2ec] ss:$12 sps:$4 sm:$0xff]   ;;  %v1128_v36 = vld [vmem:[#allocation5 + $0x154] ss:$12 sps:$4 sm:$0xff]   ;;  %v1132_v38 = vld [vmem:[#allocation5 + $0x150] ss:$12 sps:$4 sm:$0xff]  }
  0x2a   :  { %v1130_v37 = vld [vmem:[#allocation5 + $0x2d4] ss:$12 sps:$4 sm:$0xff]   ;;  %v1133_v39 = vld [vmem:[#allocation5 + $0x2d0] ss:$12 sps:$4 sm:$0xff]   ;;  %v1138_v42 = vld [vmem:[#allocation5 + $0x138] ss:$12 sps:$4 sm:$0xff]  }
  0x2b   :  { %712 = vmatpush1.bf16.msra.mxu0 %v1096_v14  ;;  %v1134_v40 = vld [vmem:[#allocation5 + $0x13c] ss:$12 sps:$4 sm:$0xff]   ;;  %v1139_v43 = vld [vmem:[#allocation5 + $0x2b8] ss:$12 sps:$4 sm:$0xff]   ;;  %v1144_v46 = vld [vmem:[#allocation5 + $0x120] ss:$12 sps:$4 sm:$0xff]  }
  0x2c   :  { %755 = vmatpush1.bf16.msra.mxu1 %v1097_v15  ;;  %713 = vmatprep.subr.bf16.mxu0 %v1098_v16  ;;  %v1136_v41 = vld [vmem:[#allocation5 + $0x2bc] ss:$12 sps:$4 sm:$0xff]   ;;  %v1140_v44 = vld [vmem:[#allocation5 + $0x124] ss:$12 sps:$4 sm:$0xff]   ;;  %v1145_v47 = vld [vmem:[#allocation5 + $0x2a0] ss:$12 sps:$4 sm:$0xff]  }
  0x2d   :  { %756 = vmatprep.subr.bf16.mxu1 %v1100_v17  ;;  %v1142_v45 = vld [vmem:[#allocation5 + $0x2a4] ss:$12 sps:$4 sm:$0xff]   ;;  %v1146_v48 = vld [vmem:[#allocation5 + $0x10c] ss:$12 sps:$4 sm:$0xff]   ;;  %v1150_v52 = vld [vmem:[#allocation5 + $0x108] ss:$12 sps:$4 sm:$0xff]  }
  0x2e   :  { %v1172_v49 = vld [vmem:[#allocation2 + $0x4] ss:$16 sps:$4 sm:$0xff]   ;;  %v1148_v50 = vld [vmem:[#allocation5 + $0x28c] ss:$12 sps:$4 sm:$0xff]   ;;  %v1156_v56 = vld [vmem:[#allocation5 + $0xf0] ss:$12 sps:$4 sm:$0xff]  }
  0x2f   :  { %714 = vmatpush1.bf16.msra.mxu0 %v1102_v18  ;;  %v1175_v51 = vld [vmem:[#allocation2 + $0xc] ss:$16 sps:$4 sm:$0xff]   ;;  %737 = vmatprep.mubr.bf16.mxu0 %v1172_v49  ;;  %v1151_v53 = vld [vmem:[#allocation5 + $0x288] ss:$12 sps:$4 sm:$0xff]   ;;  %v1162_v60 = vld [vmem:[#allocation5 + $0xd8] ss:$12 sps:$4 sm:$0xff]  }
  0x30   :  { %757 = vmatpush1.bf16.msra.mxu1 %v1103_v19  ;;  %715 = vmatprep.subr.bf16.mxu0 %v1104_v20  ;;  %v1152_v54 = vld [vmem:[#allocation5 + $0xf4] ss:$12 sps:$4 sm:$0xff]   ;;  %v1157_v57 = vld [vmem:[#allocation5 + $0x270] ss:$12 sps:$4 sm:$0xff]   ;;  %v1163_v61 = vld [vmem:[#allocation5 + $0x258] ss:$12 sps:$4 sm:$0xff]  }
  0x31   :  { %758 = vmatprep.subr.bf16.mxu1 %v1106_v21  ;;  %780 = vmatprep.mubr.bf16.mxu1 %v1175_v51  ;;  %v1154_v55 = vld [vmem:[#allocation5 + $0x274] ss:$12 sps:$4 sm:$0xff]   ;;  %v1158_v58 = vld [vmem:[#allocation5 + $0xdc] ss:$12 sps:$4 sm:$0xff]   ;;  %v1164_v62 = vld [vmem:[#allocation5 + $0xc4] ss:$12 sps:$4 sm:$0xff]  }
  0x32   :  { %v1160_v59 = vld [vmem:[#allocation5 + $0x25c] ss:$12 sps:$4 sm:$0xff]   ;;  %v1166_v63 = vld [vmem:[#allocation5 + $0x244] ss:$12 sps:$4 sm:$0xff]   ;;  %v1168_v0 = vld [vmem:[#allocation5 + $0xc0] ss:$12 sps:$4 sm:$0xff]  }
  0x33   :  { %716 = vmatpush1.bf16.msra.mxu0 %v1108_v22  ;;  %v1169_v1 = vld [vmem:[#allocation5 + $0x240] ss:$12 sps:$4 sm:$0xff]   ;;  %v1176_v2 = vld [vmem:[#allocation5 + $0x170] ss:$12 sps:$4 sm:$0xff]   ;;  %v1307_v4 = vld [vmem:[#allocation2 + $0x8] ss:$16 sps:$4 sm:$0xff]  }
  0x34   :  { %759 = vmatpush1.bf16.msra.mxu1 %v1109_v23  ;;  %717 = vmatprep.subr.bf16.mxu0 %v1110_v24  ;;  %v1305_v3 = vld [vmem:[#allocation2] ss:$16 sps:$4 sm:$0xff]   ;;  %v1180_v8 = vld [vmem:[#allocation5 + $0x158] ss:$12 sps:$4 sm:$0xff]   ;;  %v1188_v16 = vld [vmem:[#allocation5 + $0x128] ss:$12 sps:$4 sm:$0xff]  }
  0x35   :  { %760 = vmatprep.subr.bf16.mxu1 %v1112_v25  ;;  %v1177_v5 = vld [vmem:[#allocation5 + $0x2f0] ss:$12 sps:$4 sm:$0xff]   ;;  %v1181_v9 = vld [vmem:[#allocation5 + $0x2d8] ss:$12 sps:$4 sm:$0xff]   ;;  %v1184_v12 = vld [vmem:[#allocation5 + $0x140] ss:$12 sps:$4 sm:$0xff]  }
  0x36   :  { %v1178_v6 = vld [vmem:[#allocation5 + $0xb0] ss:$12 sps:$4 sm:$0xff]   ;;  %v1182_v10 = vld [vmem:[#allocation5 + $0x98] ss:$12 sps:$4 sm:$0xff]   ;;  %v1185_v13 = vld [vmem:[#allocation5 + $0x2c0] ss:$12 sps:$4 sm:$0xff]  }
  0x37   :  { %718 = vmatpush1.bf16.msra.mxu0 %v1114_v26  ;;  %v1179_v7 = vld [vmem:[#allocation5 + $0x230] ss:$12 sps:$4 sm:$0xff]   ;;  %v1183_v11 = vld [vmem:[#allocation5 + $0x218] ss:$12 sps:$4 sm:$0xff]   ;;  %v1186_v14 = vld [vmem:[#allocation5 + $0x80] ss:$12 sps:$4 sm:$0xff]  }
  0x38   :  { %761 = vmatpush1.bf16.msra.mxu1 %v1115_v27  ;;  %719 = vmatprep.subr.bf16.mxu0 %v1116_v28  ;;  %v1187_v15 = vld [vmem:[#allocation5 + $0x200] ss:$12 sps:$4 sm:$0xff]   ;;  %v1189_v17 = vld [vmem:[#allocation5 + $0x2a8] ss:$12 sps:$4 sm:$0xff]   ;;  %v1192_v20 = vld [vmem:[#allocation5 + $0x110] ss:$12 sps:$4 sm:$0xff]  }
  0x39   :  { %762 = vmatprep.subr.bf16.mxu1 %v1118_v29  ;;  %v1190_v18 = vld [vmem:[#allocation5 + $0x68] ss:$12 sps:$4 sm:$0xff]   ;;  %v1193_v21 = vld [vmem:[#allocation5 + $0x290] ss:$12 sps:$4 sm:$0xff]   ;;  %v1196_v24 = vld [vmem:[#allocation5 + $0xf8] ss:$12 sps:$4 sm:$0xff]  }
  0x3a   :  { %v1191_v19 = vld [vmem:[#allocation5 + $0x1e8] ss:$12 sps:$4 sm:$0xff]   ;;  %v1194_v22 = vld [vmem:[#allocation5 + $0x50] ss:$12 sps:$4 sm:$0xff]   ;;  %v1197_v25 = vld [vmem:[#allocation5 + $0x278] ss:$12 sps:$4 sm:$0xff]  }
  0x3b   :  { %720 = vmatpush1.bf16.msra.mxu0 %v1120_v30  ;;  %v1195_v23 = vld [vmem:[#allocation5 + $0x1d0] ss:$12 sps:$4 sm:$0xff]   ;;  %v1198_v26 = vld [vmem:[#allocation5 + $0x38] ss:$12 sps:$4 sm:$0xff]   ;;  %v1200_v28 = vld [vmem:[#allocation5 + $0xe0] ss:$12 sps:$4 sm:$0xff]  }
  0x3c   :  { %763 = vmatpush1.bf16.msra.mxu1 %v1121_v31  ;;  %721 = vmatprep.subr.bf16.mxu0 %v1122_v32  ;;  %v1199_v27 = vld [vmem:[#allocation5 + $0x1b8] ss:$12 sps:$4 sm:$0xff]   ;;  %v1201_v29 = vld [vmem:[#allocation5 + $0x260] ss:$12 sps:$4 sm:$0xff]   ;;  %v1204_v32 = vld [vmem:[#allocation5 + $0xc8] ss:$12 sps:$4 sm:$0xff]  }
  0x3d   :  { %764 = vmatprep.subr.bf16.mxu1 %v1124_v33  ;;  %v1202_v30 = vld [vmem:[#allocation5 + $0x20] ss:$12 sps:$4 sm:$0xff]   ;;  %v1205_v33 = vld [vmem:[#allocation5 + $0x248] ss:$12 sps:$4 sm:$0xff]   ;;  %s1280_s0 = smov [#allocation7]  }
  0x3e   :  { %v1203_v31 = vld [vmem:[#allocation5 + $0x1a0] ss:$12 sps:$4 sm:$0xff]   ;;  %s902_s1 = sshll.u32 %s1280_s0, 4  ;;  %s903_s1 = int_to_ptr.vmem [resolvable:$true] %s902_s1 }
  0x3f   :  { %722 = vmatpush2.bf16.msra.mxu0 %v1126_v34  ;;  %v1206_v34 = vld [vmem:[#allocation5 + $0x8] ss:$12 sps:$4 sm:$0xff]   ;;  %s1248_s23 = scalar_lea.vmem %s903_s1, 384  ;;  %p1253_p11 = scmp.lt.s32.totalorder %s903_s1, %s903_s1 }
  0x40   :  { %765 = vmatpush2.bf16.msra.mxu1 %v1127_v35  ;;  %723 = vmatprep.subr.bf16.mxu0 %v1128_v36  ;;  %v1207_v35 = vld [vmem:[#allocation5 + $0x188] ss:$12 sps:$4 sm:$0xff]   ;;  %p1249_p10 = scmp.ne.s32.totalorder %s903_s1, %s1248_s23  ;;  %p1254_p12 = scmp.lt.s32.totalorder %s1248_s23, %s1248_s23 }
  0x41   :  { %766 = vmatprep.subr.bf16.mxu1 %v1130_v37 }
  0x42   :  { %p1255_p13 = por %p1254_p12, %p1253_p11 }
  0x43   :  { %724 = vmatpush2.bf16.msra.mxu0 %v1132_v38 }
  0x44   :  { %767 = vmatpush2.bf16.msra.mxu1 %v1133_v39  ;;  %725 = vmatprep.subr.bf16.mxu0 %v1134_v40  ;;  %p1256_p0 = pnand %p1255_p13, %p1249_p10 }
  0x45   :  { %768 = vmatprep.subr.bf16.mxu1 %v1136_v41 }
  0x47   :  { %726 = vmatpush2.bf16.msra.mxu0 %v1138_v42 }
  0x48   :  { %769 = vmatpush2.bf16.msra.mxu1 %v1139_v43  ;;  %727 = vmatprep.subr.bf16.mxu0 %v1140_v44 }
  0x49   :  { %770 = vmatprep.subr.bf16.mxu1 %v1142_v45 }
  0x4b   :  { %728 = vmatpush2.bf16.msra.mxu0 %v1144_v46 }
  0x4c   :  { %771 = vmatpush2.bf16.msra.mxu1 %v1145_v47  ;;  %729 = vmatprep.subr.bf16.mxu0 %v1146_v48 }
  0x4d   :  { %772 = vmatprep.subr.bf16.mxu1 %v1148_v50 }
  0x4f   :  { %730 = vmatpush2.bf16.msra.mxu0 %v1150_v52 }
  0x50   :  { %773 = vmatpush2.bf16.msra.mxu1 %v1151_v53  ;;  %731 = vmatprep.subr.bf16.mxu0 %v1152_v54 }
  0x51   :  { %774 = vmatprep.subr.bf16.mxu1 %v1154_v55 }
  0x53   :  { %732 = vmatpush2.bf16.msra.mxu0 %v1156_v56 }
  0x54   :  { %775 = vmatpush2.bf16.msra.mxu1 %v1157_v57  ;;  %733 = vmatprep.subr.bf16.mxu0 %v1158_v58 }
  0x55   :  { %776 = vmatprep.subr.bf16.mxu1 %v1160_v59 }
  0x57   :  { %734 = vmatpush2.bf16.msra.mxu0 %v1162_v60 }
  0x58   :  { %777 = vmatpush2.bf16.msra.mxu1 %v1163_v61  ;;  %735 = vmatprep.subr.bf16.mxu0 %v1164_v62 }
  0x59   :  { %778 = vmatprep.subr.bf16.mxu1 %v1166_v63 }
  0x5b   :  { %736 = vmatpush2.bf16.msra.mxu0 %v1168_v0 }
  0x5c   :  { %779 = vmatpush2.bf16.msra.mxu1 %v1169_v1  ;;  %1023 = vmatprep.subr.bf16.mxu0 %v1176_v2 }
  0x5d   :  { %1045 = vmatprep.subr.bf16.mxu1 %v1177_v5 }
  0x5e   :  { %738 = vmatmul.mubr.bf16.vlgmr.msra.gmra.mxu0 %v1305_v3 }
  0x5f   :  { %781 = vmatmul.mubr.bf16.vlgmr.msra.gmra.mxu1 %v1307_v4  ;;  %1024 = vmatpush3.bf16.msra.mxu0 %v1178_v6 }
  0x60   :  { %1046 = vmatpush3.bf16.msra.mxu1 %v1179_v7  ;;  %1025 = vmatprep.subr.bf16.mxu0 %v1180_v8 }
  0x61   :  { %1047 = vmatprep.subr.bf16.mxu1 %v1181_v9  ;;  %823 = vmatprep.mubr.bf16.mxu0 %v1172_v49 }
  0x62   :  { %864 = vmatprep.mubr.bf16.mxu1 %v1175_v51 }
  0x63   :  { %1026 = vmatpush3.bf16.msra.mxu0 %v1182_v10 }
  0x64   :  { %1048 = vmatpush3.bf16.msra.mxu1 %v1183_v11  ;;  %1027 = vmatprep.subr.bf16.mxu0 %v1184_v12 }
  0x65   :  { %1049 = vmatprep.subr.bf16.mxu1 %v1185_v13 }
  0x67   :  { %1028 = vmatpush3.bf16.msra.mxu0 %v1186_v14 }
  0x68   :  { %1050 = vmatpush3.bf16.msra.mxu1 %v1187_v15  ;;  %1029 = vmatprep.subr.bf16.mxu0 %v1188_v16 }
  0x69   :  { %1051 = vmatprep.subr.bf16.mxu1 %v1189_v17 }
  0x6b   :  { %1030 = vmatpush3.bf16.msra.mxu0 %v1190_v18 }
  0x6c   :  { %1052 = vmatpush3.bf16.msra.mxu1 %v1191_v19  ;;  %1031 = vmatprep.subr.bf16.mxu0 %v1192_v20 }
  0x6d   :  { %1053 = vmatprep.subr.bf16.mxu1 %v1193_v21 }
  0x6f   :  { %1032 = vmatpush3.bf16.msra.mxu0 %v1194_v22 }
  0x70   :  { %1054 = vmatpush3.bf16.msra.mxu1 %v1195_v23  ;;  %1033 = vmatprep.subr.bf16.mxu0 %v1196_v24 }
  0x71   :  { %1055 = vmatprep.subr.bf16.mxu1 %v1197_v25 }
  0x73   :  { %1034 = vmatpush3.bf16.msra.mxu0 %v1198_v26 }
  0x74   :  { %1056 = vmatpush3.bf16.msra.mxu1 %v1199_v27  ;;  %1035 = vmatprep.subr.bf16.mxu0 %v1200_v28 }
  0x75   :  { %1057 = vmatprep.subr.bf16.mxu1 %v1201_v29 }
  0x77   :  { %1036 = vmatpush3.bf16.msra.mxu0 %v1202_v30 }
  0x78   :  { %1058 = vmatpush3.bf16.msra.mxu1 %v1203_v31  ;;  %1037 = vmatprep.subr.bf16.mxu0 %v1204_v32 }
  0x79   :  { %1059 = vmatprep.subr.bf16.mxu1 %v1205_v33 }
  0x7b   :  { %1038 = vmatpush3.bf16.msra.mxu0 %v1206_v34 }
  0x7c   :  { %1060 = vmatpush3.bf16.msra.mxu1 %v1207_v35 }
  0x7e   :  { %824 = vmatmul.mubr.bf16.vlgmr.msra.gmra.mxu0 %v1305_v3 }
  0x7f   :  { %865 = vmatmul.mubr.bf16.vlgmr.msra.gmra.mxu1 %v1307_v4 }
 0x11e   :  { %v739_v36 = vpop.f32.mrf.mxu0 }
 0x11f   :  { %v782_v37 = vpop.f32.mrf.mxu1 }
 0x120   :  { %v783_v38 = vadd.f32 %v782_v37, %v739_v36  ;;  %v741_v39 = vpop.f32.mrf.mxu0 }
 0x121   :  { %v784_v40 = vpop.f32.mrf.mxu1 }
 0x122   :  { %v785_v41 = vadd.f32 %v784_v40, %v741_v39  ;;  %v743_v42 = vpop.f32.mrf.mxu0 }
 0x123   :  { %v786_v43 = vpop.f32.mrf.mxu1 }
 0x124   :  { %v1019_v44 = vpack.c.bf16 %v785_v41, %v783_v38  ;;  %v745_v45 = vpop.f32.mrf.mxu0  ;;  %v787_v47 = vadd.f32 %v786_v43, %v743_v42 }
 0x125   :  { %v788_v46 = vpop.f32.mrf.mxu1 }
 0x126   :  { %893 = vst [vmem:[#allocation7] sm:$0xff] %v1019_v44  ;;  %v789_v48 = vadd.f32 %v788_v46, %v745_v45 }
 0x128   :  { %v1021_v49 = vpack.c.bf16 %v789_v48, %v787_v47 }
 0x12a   :  { %895 = vst [vmem:[#allocation7 + $0xc] sm:$0xff] %v1021_v49 }
 0x13e   :  { %v1039_v50 = vpop.f32.mrf.mxu0 }
 0x13f   :  { %v1061_v51 = vpop.f32.mrf.mxu1 }
 0x140   :  { %v1040_v52 = vpop.f32.mrf.mxu0 }
 0x141   :  { %v1062_v53 = vpop.f32.mrf.mxu1  ;;  %v1041_v54 = vadd.f32 %v1040_v52, %v1039_v50 }
 0x142   :  { %v1063_v55 = vadd.f32 %v1062_v53, %v1061_v51  ;;  %v1042_v56 = vpop.f32.mrf.mxu0 }
 0x143   :  { %v1064_v57 = vpop.f32.mrf.mxu1 }
 0x144   :  { %v867_v58 = vadd.f32 %v1063_v55, %v1041_v54  ;;  %v1043_v59 = vpop.f32.mrf.mxu0 }
 0x145   :  { %v1065_v60 = vpop.f32.mrf.mxu1  ;;  %v1044_v62 = vadd.f32 %v1043_v59, %v1042_v56 }
 0x146   :  { %v1020_v61 = vpack.c.bf16 %v867_v58, %v867_v58  ;;  %v1066_v63 = vadd.f32 %v1065_v60, %v1064_v57 }
 0x148   :  { %894 = vst [vmem:[#allocation7 + $0x8] sm:$0xf] %v1020_v61  ;;  %v870_v0 = vadd.f32 %v1066_v63, %v1044_v62 }
 0x14a   :  { %v1022_v1 = vpack.c.bf16 %v870_v0, %v870_v0 }
 0x14c   :  { %896 = vst [vmem:[#allocation7 + $0x14] sm:$0xf] %v1022_v1 }
 0x14d   :  { %1259 = shalt.err (!%p1256_p0)
}
 0x14e   :  { %908 = dma.vmem_to_hbm [thread:$0]  %s903_s1, 384, %s1321_s2, [#allocation4], %s1278_s19, %s1278_s19, %s1279_s20  }
 0x14f   :  { %1272 = dma.done.wait [#allocation4], 384  }
 0x150   :  { %1273 = vsyncadd [#allocation4], 4294966912 }
 0x151   :  { %912 = vsyncpa [#allocation3], 1 }
 0x152   :  { %913 = vsyncpa [#allocation6], 1 }
 0x153   :  { %914 = vsyncpa [#allocation4], 1 }

</bundles_post_ra>
